<compile_context>
chip_gen: v5e
topology: v5e:2x2
jax: 0.10.0
libtpu: 0.0.40
codegen_flags: <defaults>
</compile_context>

<pallas_src>
import functools

import jax
import jax.numpy as jnp
import numpy as np
from jax import lax
from jax.experimental import pallas as pl
from jax.experimental.pallas import tpu as pltpu


# ----------------------------- Pallas kernel --------------------------------
def _convmp_kernel(xq_ref, w_ref, b_ref, o_ref, *, S, KH, KW):
    """Fused 3x3 conv (in-kernel im2col) + BN(eval) + ReLU + 2x2 max-pool.

    xq_ref : (4, C, TL) bf16  quadrant-decomposed input; leading axis is the input
                              2x2 quadrant (a, b) -> 2a+b; lane axis TL is the
                              flattened per-image padded pooled grid
                              (R = PH+2 rows, S = PW+2 cols) plus zero margins.
    w_ref  : (OC, KH*KW*C) bf16  BN-folded conv weight, K ordered (kh, kw, c).
    b_ref  : (OC, 1) f32         BN-folded bias.
    o_ref  : (OC, TL) f32        pooled output, same lane layout as xq_ref.
    """
    TL = o_ref.shape[-1]

    w = w_ref[...]          # (OC, K) bf16
    bias = b_ref[...]       # (OC, 1) f32

    # Cache of lane-shifted (C, TL) slabs, keyed by (source quadrant, static shift).
    # The 36 (quadrant, tap) combinations only need <= 16 distinct slabs.
    slab_cache = {}

    def shifted_slab(src_quad, sigma):
        # Output lane m must read input lane (m + sigma) mod TL.  sigma is a static
        # Python int with |sigma| <= S+1; the circular wrap only touches per-image
        # margin lanes, which the wrapper slices away.
        key = (src_quad, sigma)
        if key not in slab_cache:
            x = xq_ref[src_quad]                                  # (C, TL) bf16
            s = sigma % TL
            if s != 0:
                x = jnp.concatenate([x[:, s:], x[:, :s]], axis=1)  # static lane roll
            slab_cache[key] = x
        return slab_cache[key]

    acc = None
    for pa in range(2):              # output-row parity inside the 2x2 pool window
        for pb in range(2):          # output-col parity
            parts = []
            for kh in range(KH):
                # conv tap offset (kh-1) in original rows -> pooled-row shift dr and
                # source row-quadrant ra:  (pa + kh - 1) = 2*dr + ra
                dr, ra = divmod(pa + kh - 1, 2)
                for kw in range(KW):
                    dc, rb = divmod(pb + kw - 1, 2)
                    parts.append(shifted_slab(ra * 2 + rb, dr * S + dc))
            patch = jnp.concatenate(parts, axis=0)                # (K, TL): im2col in VMEM
            z = jnp.dot(w, patch, preferred_element_type=jnp.float32)   # (OC, TL) f32
            acc = z if acc is None else jnp.maximum(acc, z)       # incremental 2x2 max
    # The per-channel bias is shared across the pool window and ReLU is monotone,
    # so adding the bias and applying ReLU after the max is exact.
    o_ref[...] = jnp.maximum(acc + bias, 0.0)


# ------------------------------- wrapper -------------------------------------
def conv_mp_forward(x_nchw, conv_w, conv_b, bn_gamma, bn_beta, bn_mean, bn_var,
                    eps=1e-5):
    """x_nchw: (N, C, H, W) f32.  Returns (N, OC, H//2, W//2) f32."""
    N, C, H, W = x_nchw.shape
    OC, _, KH, KW = conv_w.shape
    assert (KH, KW) == (3, 3), "kernel specialized for 3x3 conv"
    assert H % 2 == 0 and W % 2 == 0
    PH, PW = H // 2, W // 2
    R, S = PH + 2, PW + 2            # pooled grid + 1-halo (= conv zero padding)
    K = C * KH * KW

    # --- BN (eval-mode) folding into conv weight/bias ---
    a_scale = bn_gamma / jnp.sqrt(bn_var + eps)                 # (OC,)
    w_folded = conv_w * a_scale[:, None, None, None]            # (OC, C, KH, KW)
    b_folded = a_scale * (conv_b - bn_mean) + bn_beta           # (OC,)
    # K ordering (kh, kw, c) matches the in-kernel patch concatenation order.
    w_mat = jnp.transpose(w_folded, (0, 2, 3, 1)).reshape(OC, K).astype(jnp.bfloat16)
    b_col = b_folded.reshape(OC, 1).astype(jnp.float32)

    # --- 1x-size quadrant (space-to-depth) relayout of the input -------------
    # (replaces the old 9x im2col HBM expansion; patches are now built in VMEM)
    xb = x_nchw.astype(jnp.bfloat16)                            # cast early (review 7)
    xq = xb.reshape(N, C, PH, 2, PW, 2)
    xq = jnp.transpose(xq, (3, 5, 1, 0, 2, 4))                  # (2, 2, C, N, PH, PW)
    xq = xq.reshape(4, C, N, PH, PW)
    xq = jnp.pad(xq, ((0, 0), (0, 0), (0, 0), (1, 1), (1, 1)))  # conv zero-pad halo
    xq = xq.reshape(4, C, N, R * S)

    # Per-image flattened layout: [front margin][R*S padded pooled grid][back pad].
    # Margins >= S+1 keep every in-kernel lane shift inside the image's segment, so
    # all valid output lanes read correct data and only discarded lanes see wrap.
    front = S + 1
    Li = ((R * S + 2 * (S + 1) + 127) // 128) * 128             # lane-aligned per image
    back = Li - front - R * S
    xq = jnp.pad(xq, ((0, 0), (0, 0), (0, 0), (front, back)))
    xq = xq.reshape(4, C, N * Li)

    # --- batch tiling: large per-step tiles, grid >= 2 when possible (v7x) ----
    nb = max(1, min(N, 2048 // Li))
    nb = min(nb, max(1, N // 2))
    while N % nb:
        nb -= 1
    grid = (N // nb,)
    TL = nb * Li

    kernel = functools.partial(_convmp_kernel, S=S, KH=KH, KW=KW)
    out_flat = pl.pallas_call(
        kernel,
        out_shape=jax.ShapeDtypeStruct((OC, N * Li), jnp.float32),
        grid=grid,
        in_specs=[
            pl.BlockSpec((4, C, TL), lambda i: (0, 0, i)),      # per-batch-group input
            pl.BlockSpec((OC, K), lambda i: (0, 0)),            # resident weight
            pl.BlockSpec((OC, 1), lambda i: (0, 0)),            # resident bias
        ],
        out_specs=pl.BlockSpec((OC, TL), lambda i: (0, i)),     # lane-dense output block
        compiler_params=pltpu.CompilerParams(
            dimension_semantics=("parallel",)),
    )(xq, w_mat, b_col)

    # --- strip per-image margins / halo, back to NCHW -------------------------
    out = out_flat.reshape(OC, N, Li)[:, :, front:front + R * S]
    out = out.reshape(OC, N, R, S)[:, :, 1:1 + PH, 1:1 + PW]     # (OC, N, PH, PW)
    return jnp.transpose(out, (1, 0, 2, 3))                     # (N, OC, PH, PW)


# ---------------------------- pure-JAX reference ------------------------------
def conv_mp_reference(x, conv_w, conv_b, gamma, beta, mean, var, eps=1e-5):
    y = lax.conv_general_dilated(
        x, conv_w, window_strides=(1, 1), padding=((1, 1), (1, 1)),
        dimension_numbers=('NCHW', 'OIHW', 'NCHW'))
    y = y + conv_b[None, :, None, None]
    y = (y - mean[None, :, None, None]) / jnp.sqrt(var[None, :, None, None] + eps)
    y = y * gamma[None, :, None, None] + beta[None, :, None, None]
    y = jnp.maximum(y, 0.0)
    y = lax.reduce_window(y, -jnp.inf, lax.max,
                          window_dimensions=(1, 1, 2, 2),
                          window_strides=(1, 1, 2, 2), padding='VALID')
    return y


if __name__ == "__main__":
    # small shapes: N=2, C=4, H=W=16, OC=8, kernel 3x3 pad 1, pool 2
    N, C, H, W, OC, KH, KW = 2, 4, 16, 16, 8, 3, 3

    key = jax.random.PRNGKey(0)
    kx, kw_, kb, kg, kbe, km, kv = jax.random.split(key, 7)

    x = jax.random.normal(kx, (N, C, H, W), dtype=jnp.float32)

    # deterministic synthetic parameters (no checkpoint)
    fan_in = C * KH * KW
    bound = 1.0 / np.sqrt(fan_in)
    conv_w = jax.random.uniform(kw_, (OC, C, KH, KW), jnp.float32, -bound, bound)
    conv_b = jax.random.uniform(kb, (OC,), jnp.float32, -bound, bound)
    bn_gamma = 1.0 + 0.1 * jax.random.normal(kg, (OC,), jnp.float32)
    bn_beta = 0.1 * jax.random.normal(kbe, (OC,), jnp.float32)
    bn_mean = 0.05 * jax.random.normal(km, (OC,), jnp.float32)
    bn_var = 1.0 + 0.1 * jnp.abs(jax.random.normal(kv, (OC,), jnp.float32))

    fwd = jax.jit(conv_mp_forward)
    out = jax.block_until_ready(
        fwd(x, conv_w, conv_b, bn_gamma, bn_beta, bn_mean, bn_var))
    ref = jax.block_until_ready(
        conv_mp_reference(x, conv_w, conv_b, bn_gamma, bn_beta, bn_mean, bn_var))

    assert out.shape == (N, OC, H // 2, W // 2), out.shape
    # bf16 inputs/weights with f32 MXU accumulation vs. a pure-f32 reference.
    np.testing.assert_allclose(np.asarray(out), np.asarray(ref),
                               rtol=2e-2, atol=2e-2)
    print("KERNEL_OK")
</pallas_src>

<mosaic_0001>
module attributes {stable_mosaic.version = 11 : i64} {
  func.func @_convmp_kernel(%arg0: i32, %arg1: memref<4x4x128xbf16, #tpu.memory_space<vmem>>, %arg2: memref<8x36xbf16, #tpu.memory_space<vmem>>, %arg3: memref<8x1xf32, #tpu.memory_space<vmem>>, %arg4: memref<8x128xf32, #tpu.memory_space<vmem>>) attributes {dimension_semantics = [#tpu.dimension_semantics<parallel>], iteration_bounds = array<i64: 2>, scalar_prefetch = 0 : i64, scratch_operands = 0 : i64, tpu.core_type = #tpu.core_type<tc>, window_params = [{transform_indices = @transform_0, window_bounds = array<i64: 4, 4, 128>}, {pipeline_mode = #tpu.pipeline_mode<synchronous>, transform_indices = @transform_1, window_bounds = array<i64: 8, 36>}, {pipeline_mode = #tpu.pipeline_mode<synchronous>, transform_indices = @transform_2, window_bounds = array<i64: 8, 1>}, {transform_indices = @transform_3, window_bounds = array<i64: 8, 128>}]} {
    %c0 = arith.constant 0 : index
    %c0_0 = arith.constant 0 : index
    %0 = vector.load %arg2[%c0, %c0_0] : memref<8x36xbf16, #tpu.memory_space<vmem>>, vector<8x36xbf16>
    %c0_1 = arith.constant 0 : index
    %c0_2 = arith.constant 0 : index
    %1 = vector.load %arg3[%c0_1, %c0_2] : memref<8x1xf32, #tpu.memory_space<vmem>>, vector<8x1xf32>
    %c3 = arith.constant 3 : index
    %c0_3 = arith.constant 0 : index
    %c0_4 = arith.constant 0 : index
    %2 = vector.load %arg1[%c3, %c0_3, %c0_4] : memref<4x4x128xbf16, #tpu.memory_space<vmem>>, vector<1x4x128xbf16>
    %3 = vector.shape_cast %2 : vector<1x4x128xbf16> to vector<4x128xbf16>
    %4 = vector.extract_strided_slice %3 {offsets = [0, 117], sizes = [4, 11], strides = [1, 1]} : vector<4x128xbf16> to vector<4x11xbf16>
    %5 = vector.extract_strided_slice %3 {offsets = [0, 0], sizes = [4, 117], strides = [1, 1]} : vector<4x128xbf16> to vector<4x117xbf16>
    %6 = tpu.concatenate %4, %5 in 1 : vector<4x11xbf16>, vector<4x117xbf16> -> vector<4x128xbf16>
    %c2 = arith.constant 2 : index
    %c0_5 = arith.constant 0 : index
    %c0_6 = arith.constant 0 : index
    %7 = vector.load %arg1[%c2, %c0_5, %c0_6] : memref<4x4x128xbf16, #tpu.memory_space<vmem>>, vector<1x4x128xbf16>
    %8 = vector.shape_cast %7 : vector<1x4x128xbf16> to vector<4x128xbf16>
    %9 = vector.extract_strided_slice %8 {offsets = [0, 118], sizes = [4, 10], strides = [1, 1]} : vector<4x128xbf16> to vector<4x10xbf16>
    %10 = vector.extract_strided_slice %8 {offsets = [0, 0], sizes = [4, 118], strides = [1, 1]} : vector<4x128xbf16> to vector<4x118xbf16>
    %11 = tpu.concatenate %9, %10 in 1 : vector<4x10xbf16>, vector<4x118xbf16> -> vector<4x128xbf16>
    %c3_7 = arith.constant 3 : index
    %c0_8 = arith.constant 0 : index
    %c0_9 = arith.constant 0 : index
    %12 = vector.load %arg1[%c3_7, %c0_8, %c0_9] : memref<4x4x128xbf16, #tpu.memory_space<vmem>>, vector<1x4x128xbf16>
    %13 = vector.shape_cast %12 : vector<1x4x128xbf16> to vector<4x128xbf16>
    %14 = vector.extract_strided_slice %13 {offsets = [0, 118], sizes = [4, 10], strides = [1, 1]} : vector<4x128xbf16> to vector<4x10xbf16>
    %15 = vector.extract_strided_slice %13 {offsets = [0, 0], sizes = [4, 118], strides = [1, 1]} : vector<4x128xbf16> to vector<4x118xbf16>
    %16 = tpu.concatenate %14, %15 in 1 : vector<4x10xbf16>, vector<4x118xbf16> -> vector<4x128xbf16>
    %c1 = arith.constant 1 : index
    %c0_10 = arith.constant 0 : index
    %c0_11 = arith.constant 0 : index
    %17 = vector.load %arg1[%c1, %c0_10, %c0_11] : memref<4x4x128xbf16, #tpu.memory_space<vmem>>, vector<1x4x128xbf16>
    %18 = vector.shape_cast %17 : vector<1x4x128xbf16> to vector<4x128xbf16>
    %19 = vector.extract_strided_slice %18 {offsets = [0, 127], sizes = [4, 1], strides = [1, 1]} : vector<4x128xbf16> to vector<4x1xbf16>
    %20 = vector.extract_strided_slice %18 {offsets = [0, 0], sizes = [4, 127], strides = [1, 1]} : vector<4x128xbf16> to vector<4x127xbf16>
    %21 = tpu.concatenate %19, %20 in 1 : vector<4x1xbf16>, vector<4x127xbf16> -> vector<4x128xbf16>
    %c0_12 = arith.constant 0 : index
    %c0_13 = arith.constant 0 : index
    %c0_14 = arith.constant 0 : index
    %22 = vector.load %arg1[%c0_12, %c0_13, %c0_14] : memref<4x4x128xbf16, #tpu.memory_space<vmem>>, vector<1x4x128xbf16>
    %23 = vector.shape_cast %22 : vector<1x4x128xbf16> to vector<4x128xbf16>
    %c1_15 = arith.constant 1 : index
    %c0_16 = arith.constant 0 : index
    %c0_17 = arith.constant 0 : index
    %24 = vector.load %arg1[%c1_15, %c0_16, %c0_17] : memref<4x4x128xbf16, #tpu.memory_space<vmem>>, vector<1x4x128xbf16>
    %25 = vector.shape_cast %24 : vector<1x4x128xbf16> to vector<4x128xbf16>
    %c3_18 = arith.constant 3 : index
    %c0_19 = arith.constant 0 : index
    %c0_20 = arith.constant 0 : index
    %26 = vector.load %arg1[%c3_18, %c0_19, %c0_20] : memref<4x4x128xbf16, #tpu.memory_space<vmem>>, vector<1x4x128xbf16>
    %27 = vector.shape_cast %26 : vector<1x4x128xbf16> to vector<4x128xbf16>
    %28 = vector.extract_strided_slice %27 {offsets = [0, 127], sizes = [4, 1], strides = [1, 1]} : vector<4x128xbf16> to vector<4x1xbf16>
    %29 = vector.extract_strided_slice %27 {offsets = [0, 0], sizes = [4, 127], strides = [1, 1]} : vector<4x128xbf16> to vector<4x127xbf16>
    %30 = tpu.concatenate %28, %29 in 1 : vector<4x1xbf16>, vector<4x127xbf16> -> vector<4x128xbf16>
    %c2_21 = arith.constant 2 : index
    %c0_22 = arith.constant 0 : index
    %c0_23 = arith.constant 0 : index
    %31 = vector.load %arg1[%c2_21, %c0_22, %c0_23] : memref<4x4x128xbf16, #tpu.memory_space<vmem>>, vector<1x4x128xbf16>
    %32 = vector.shape_cast %31 : vector<1x4x128xbf16> to vector<4x128xbf16>
    %c3_24 = arith.constant 3 : index
    %c0_25 = arith.constant 0 : index
    %c0_26 = arith.constant 0 : index
    %33 = vector.load %arg1[%c3_24, %c0_25, %c0_26] : memref<4x4x128xbf16, #tpu.memory_space<vmem>>, vector<1x4x128xbf16>
    %34 = vector.shape_cast %33 : vector<1x4x128xbf16> to vector<4x128xbf16>
    %35 = tpu.concatenate %6, %11, %16, %21, %23, %25, %30, %32, %34 in 0 : vector<4x128xbf16>, vector<4x128xbf16>, vector<4x128xbf16>, vector<4x128xbf16>, vector<4x128xbf16>, vector<4x128xbf16>, vector<4x128xbf16>, vector<4x128xbf16>, vector<4x128xbf16> -> vector<36x128xbf16>
    %cst = arith.constant dense<0.000000e+00> : vector<8x128xf32>
    %36 = tpu.matmul %0, %35, %cst {dimension_numbers = #tpu.dot_dimension_numbers<[1], [0], [0], [1], [0, 0, 1, 1], [], []>} : vector<8x36xbf16>, vector<36x128xbf16>, vector<8x128xf32> -> vector<8x128xf32>
    %c2_27 = arith.constant 2 : index
    %c0_28 = arith.constant 0 : index
    %c0_29 = arith.constant 0 : index
    %37 = vector.load %arg1[%c2_27, %c0_28, %c0_29] : memref<4x4x128xbf16, #tpu.memory_space<vmem>>, vector<1x4x128xbf16>
    %38 = vector.shape_cast %37 : vector<1x4x128xbf16> to vector<4x128xbf16>
    %39 = vector.extract_strided_slice %38 {offsets = [0, 119], sizes = [4, 9], strides = [1, 1]} : vector<4x128xbf16> to vector<4x9xbf16>
    %40 = vector.extract_strided_slice %38 {offsets = [0, 0], sizes = [4, 119], strides = [1, 1]} : vector<4x128xbf16> to vector<4x119xbf16>
    %41 = tpu.concatenate %39, %40 in 1 : vector<4x9xbf16>, vector<4x119xbf16> -> vector<4x128xbf16>
    %c0_30 = arith.constant 0 : index
    %c0_31 = arith.constant 0 : index
    %c0_32 = arith.constant 0 : index
    %42 = vector.load %arg1[%c0_30, %c0_31, %c0_32] : memref<4x4x128xbf16, #tpu.memory_space<vmem>>, vector<1x4x128xbf16>
    %43 = vector.shape_cast %42 : vector<1x4x128xbf16> to vector<4x128xbf16>
    %44 = vector.extract_strided_slice %43 {offsets = [0, 1], sizes = [4, 127], strides = [1, 1]} : vector<4x128xbf16> to vector<4x127xbf16>
    %45 = vector.extract_strided_slice %43 {offsets = [0, 0], sizes = [4, 1], strides = [1, 1]} : vector<4x128xbf16> to vector<4x1xbf16>
    %46 = tpu.concatenate %44, %45 in 1 : vector<4x127xbf16>, vector<4x1xbf16> -> vector<4x128xbf16>
    %c2_33 = arith.constant 2 : index
    %c0_34 = arith.constant 0 : index
    %c0_35 = arith.constant 0 : index
    %47 = vector.load %arg1[%c2_33, %c0_34, %c0_35] : memref<4x4x128xbf16, #tpu.memory_space<vmem>>, vector<1x4x128xbf16>
    %48 = vector.shape_cast %47 : vector<1x4x128xbf16> to vector<4x128xbf16>
    %49 = vector.extract_strided_slice %48 {offsets = [0, 1], sizes = [4, 127], strides = [1, 1]} : vector<4x128xbf16> to vector<4x127xbf16>
    %50 = vector.extract_strided_slice %48 {offsets = [0, 0], sizes = [4, 1], strides = [1, 1]} : vector<4x128xbf16> to vector<4x1xbf16>
    %51 = tpu.concatenate %49, %50 in 1 : vector<4x127xbf16>, vector<4x1xbf16> -> vector<4x128xbf16>
    %52 = tpu.concatenate %11, %16, %41, %23, %25, %46, %32, %34, %51 in 0 : vector<4x128xbf16>, vector<4x128xbf16>, vector<4x128xbf16>, vector<4x128xbf16>, vector<4x128xbf16>, vector<4x128xbf16>, vector<4x128xbf16>, vector<4x128xbf16>, vector<4x128xbf16> -> vector<36x128xbf16>
    %cst_36 = arith.constant dense<0.000000e+00> : vector<8x128xf32>
    %53 = tpu.matmul %0, %52, %cst_36 {dimension_numbers = #tpu.dot_dimension_numbers<[1], [0], [0], [1], [0, 0, 1, 1], [], []>} : vector<8x36xbf16>, vector<36x128xbf16>, vector<8x128xf32> -> vector<8x128xf32>
    %54 = arith.maximumf %36, %53 : vector<8x128xf32>
    %c1_37 = arith.constant 1 : index
    %c0_38 = arith.constant 0 : index
    %c0_39 = arith.constant 0 : index
    %55 = vector.load %arg1[%c1_37, %c0_38, %c0_39] : memref<4x4x128xbf16, #tpu.memory_space<vmem>>, vector<1x4x128xbf16>
    %56 = vector.shape_cast %55 : vector<1x4x128xbf16> to vector<4x128xbf16>
    %57 = vector.extract_strided_slice %56 {offsets = [0, 9], sizes = [4, 119], strides = [1, 1]} : vector<4x128xbf16> to vector<4x119xbf16>
    %58 = vector.extract_strided_slice %56 {offsets = [0, 0], sizes = [4, 9], strides = [1, 1]} : vector<4x128xbf16> to vector<4x9xbf16>
    %59 = tpu.concatenate %57, %58 in 1 : vector<4x119xbf16>, vector<4x9xbf16> -> vector<4x128xbf16>
    %c0_40 = arith.constant 0 : index
    %c0_41 = arith.constant 0 : index
    %c0_42 = arith.constant 0 : index
    %60 = vector.load %arg1[%c0_40, %c0_41, %c0_42] : memref<4x4x128xbf16, #tpu.memory_space<vmem>>, vector<1x4x128xbf16>
    %61 = vector.shape_cast %60 : vector<1x4x128xbf16> to vector<4x128xbf16>
    %62 = vector.extract_strided_slice %61 {offsets = [0, 10], sizes = [4, 118], strides = [1, 1]} : vector<4x128xbf16> to vector<4x118xbf16>
    %63 = vector.extract_strided_slice %61 {offsets = [0, 0], sizes = [4, 10], strides = [1, 1]} : vector<4x128xbf16> to vector<4x10xbf16>
    %64 = tpu.concatenate %62, %63 in 1 : vector<4x118xbf16>, vector<4x10xbf16> -> vector<4x128xbf16>
    %c1_43 = arith.constant 1 : index
    %c0_44 = arith.constant 0 : index
    %c0_45 = arith.constant 0 : index
    %65 = vector.load %arg1[%c1_43, %c0_44, %c0_45] : memref<4x4x128xbf16, #tpu.memory_space<vmem>>, vector<1x4x128xbf16>
    %66 = vector.shape_cast %65 : vector<1x4x128xbf16> to vector<4x128xbf16>
    %67 = vector.extract_strided_slice %66 {offsets = [0, 10], sizes = [4, 118], strides = [1, 1]} : vector<4x128xbf16> to vector<4x118xbf16>
    %68 = vector.extract_strided_slice %66 {offsets = [0, 0], sizes = [4, 10], strides = [1, 1]} : vector<4x128xbf16> to vector<4x10xbf16>
    %69 = tpu.concatenate %67, %68 in 1 : vector<4x118xbf16>, vector<4x10xbf16> -> vector<4x128xbf16>
    %70 = tpu.concatenate %21, %23, %25, %30, %32, %34, %59, %64, %69 in 0 : vector<4x128xbf16>, vector<4x128xbf16>, vector<4x128xbf16>, vector<4x128xbf16>, vector<4x128xbf16>, vector<4x128xbf16>, vector<4x128xbf16>, vector<4x128xbf16>, vector<4x128xbf16> -> vector<36x128xbf16>
    %cst_46 = arith.constant dense<0.000000e+00> : vector<8x128xf32>
    %71 = tpu.matmul %0, %70, %cst_46 {dimension_numbers = #tpu.dot_dimension_numbers<[1], [0], [0], [1], [0, 0, 1, 1], [], []>} : vector<8x36xbf16>, vector<36x128xbf16>, vector<8x128xf32> -> vector<8x128xf32>
    %72 = arith.maximumf %54, %71 : vector<8x128xf32>
    %c0_47 = arith.constant 0 : index
    %c0_48 = arith.constant 0 : index
    %c0_49 = arith.constant 0 : index
    %73 = vector.load %arg1[%c0_47, %c0_48, %c0_49] : memref<4x4x128xbf16, #tpu.memory_space<vmem>>, vector<1x4x128xbf16>
    %74 = vector.shape_cast %73 : vector<1x4x128xbf16> to vector<4x128xbf16>
    %75 = vector.extract_strided_slice %74 {offsets = [0, 11], sizes = [4, 117], strides = [1, 1]} : vector<4x128xbf16> to vector<4x117xbf16>
    %76 = vector.extract_strided_slice %74 {offsets = [0, 0], sizes = [4, 11], strides = [1, 1]} : vector<4x128xbf16> to vector<4x11xbf16>
    %77 = tpu.concatenate %75, %76 in 1 : vector<4x117xbf16>, vector<4x11xbf16> -> vector<4x128xbf16>
    %78 = tpu.concatenate %23, %25, %46, %32, %34, %51, %64, %69, %77 in 0 : vector<4x128xbf16>, vector<4x128xbf16>, vector<4x128xbf16>, vector<4x128xbf16>, vector<4x128xbf16>, vector<4x128xbf16>, vector<4x128xbf16>, vector<4x128xbf16>, vector<4x128xbf16> -> vector<36x128xbf16>
    %cst_50 = arith.constant dense<0.000000e+00> : vector<8x128xf32>
    %79 = tpu.matmul %0, %78, %cst_50 {dimension_numbers = #tpu.dot_dimension_numbers<[1], [0], [0], [1], [0, 0, 1, 1], [], []>} : vector<8x36xbf16>, vector<36x128xbf16>, vector<8x128xf32> -> vector<8x128xf32>
    %80 = arith.maximumf %72, %79 : vector<8x128xf32>
    %81 = vector.broadcast %1 : vector<8x1xf32> to vector<8x128xf32>
    %82 = arith.addf %80, %81 : vector<8x128xf32>
    %cst_51 = arith.constant 0.000000e+00 : f32
    %83 = vector.broadcast %cst_51 : f32 to vector<8x128xf32>
    %84 = arith.maximumf %82, %83 : vector<8x128xf32>
    %c0_52 = arith.constant 0 : index
    %c0_53 = arith.constant 0 : index
    %85 = vector.load %arg4[%c0_52, %c0_53] : memref<8x128xf32, #tpu.memory_space<vmem>>, vector<8x128xf32>
    tpu.vector_store %arg4[%c0_52, %c0_53], %84 {strides = array<i32>} : memref<8x128xf32, #tpu.memory_space<vmem>>, vector<8x128xf32>,
    return
  }
  func.func @transform_0(%arg0: i32) -> (i32, i32, i32) {
    %c0_i32 = arith.constant 0 : i32
    %c0_i32_0 = arith.constant 0 : i32
    %c0_i32_1 = arith.constant 0 : i32
    return %c0_i32, %c0_i32_0, %arg0 : i32, i32, i32
  }
  func.func @transform_1(%arg0: i32) -> (i32, i32) {
    %c0_i32 = arith.constant 0 : i32
    %c0_i32_0 = arith.constant 0 : i32
    %c0_i32_1 = arith.constant 0 : i32
    return %c0_i32, %c0_i32_0 : i32, i32
  }
  func.func @transform_2(%arg0: i32) -> (i32, i32) {
    %c0_i32 = arith.constant 0 : i32
    %c0_i32_0 = arith.constant 0 : i32
    %c0_i32_1 = arith.constant 0 : i32
    return %c0_i32, %c0_i32_0 : i32, i32
  }
  func.func @transform_3(%arg0: i32) -> (i32, i32) {
    %c0_i32 = arith.constant 0 : i32
    %c0_i32_0 = arith.constant 0 : i32
    return %c0_i32, %arg0 : i32, i32
  }
}

</mosaic_0001>

<bundles_post_ra>
// kernel: conv_mp_forward.1
= control target key start
LH: loop header
LB: loop body
LE: loop exit
PB: predicated region body
PF: predicated region fallthrough
CT: control target
= control target key end

     0   :  { %s744_s12 = smov 0   ;;  %s746_s13 = smov 0   ;;  %s940_s0 = inlined_call_operand.vmem [shape: bf16[4,4,256], index: 0, kind: input, shape index: {}]   ;;  %s941_s1 = inlined_call_operand.vmem [shape: bf16[8,36], index: 1, kind: input, shape index: {}]   ;;  %s942_s2 = inlined_call_operand.vmem [shape: f32[8,1], index: 2, kind: input, shape index: {}]   ;;  %s943_s3 = inlined_call_operand.vmem [shape: f32[8,256], index: 3, kind: output, shape index: {}]  }
   0x1   :  { %s748_s14 = smov 0  }
   0x2 LB: > { %s639_s15 = sadd.s32 4294967295, %s713_s14   ;;  %s761_s16 = sadd.s32 1, %s713_s14   ;;  %s713_s14 = sphi %s748_s14, %s946_s14   ;;  %s709_s13 = sphi %s746_s13, %s945_s13   ;;  %s705_s12 = sphi %s744_s12, %s944_s12  }
   0x3   : > { %s17_s17 = ssub.s32 %s713_s14, %s761_s16  ;;  %s20_s18 = sadd.s32 1, %s709_s13 }
   0x4   : > { %p18_p0 = scmp.eq.s32.totalorder %s17_s17, 0  ;;  %p27_p1 = scmp.ne.s32.totalorder %s709_s13, %s705_s12 }
   0x5   : > { %p28_p2 = scmp.eq.s32.totalorder %s713_s14, 0  ;;  %p642_p4 = scmp.ge.s32.totalorder %s713_s14, 2 }
   0x6   : > { %s770_s19 = scalar_select %p18_p0, %s709_s13, %s20_s18  }
   0x7   : > { %p29_p3 = por %p28_p2, %p27_p1  ;;  %127 = sbr.rel (%p642_p4) target bundleno = 20 (0x14), region = 24 }
   0xc   : > { %130 = sbr.rel (!%p29_p3) target bundleno = 20 (0x14), region = 28  ;;  %s132_s20 = sand.u32 (%p29_p3), 1, %s709_s13  }
   0xd   : > { %s644_s21 = sshll.u32 (%p29_p3), %s713_s14, 1  ;;  %s643_s22 = sshll.u32 (%p29_p3), %s132_s20, 3 }
   0xe   : > { %s136_s25 = scalar_lea.vmem (%p29_p3), %s940_s0, %s644_s21  ;;  %s134_s26 = scalar_lea.vmem (%p29_p3), [#allocation2], %s643_s22 }
   0xf   : > { %v153_v0 = vld [vmem:[%s136_s25] sm:$0x3] (%p29_p3)  ;;  %v155_v1 = vld [vmem:[%s136_s25 + $0x4] sm:$0x3] (%p29_p3)  ;;  %v157_v2 = vld [vmem:[%s136_s25 + $0x8] sm:$0x3] (%p29_p3) }
  0x10   : > { %154 = vst [vmem:[%s134_s26] sm:$0x3] (%p29_p3), %v153_v0  ;;  %v159_v3 = vld [vmem:[%s136_s25 + $0xc] sm:$0x3] (%p29_p3) }
  0x11   : > { %156 = vst [vmem:[%s134_s26 + $0x2] sm:$0x3] %v155_v1 }
  0x12   : > { %158 = vst [vmem:[%s134_s26 + $0x4] sm:$0x3] %v157_v2 }
  0x13   : > { %160 = vst [vmem:[%s134_s26 + $0x6] sm:$0x3] %v159_v3 }
  0x14 PF: > { %p645_p5 = scmp.ge.s32.totalorder %s713_s14, 1  ;;  %p191_p6 = scmp.lt.s32.totalorder %s713_s14, 3 }
  0x16   : > { %p192_p7 = pnand %p645_p5, %p191_p6 }
  0x17   : > { %s198_s27 = sand.u32 (!%p192_p7), 1, %s705_s12   ;;  %s715_s30 = smov (!%p192_p7), 10  }
  0x18   : > { %195 = sbr.rel (%p192_p7) target bundleno = 561 (0x231), region = 69  ;;  %s646_s28 = sshll.u32 (!%p192_p7), %s198_s27, 3 }
  0x19   : > { %s781_s29 = scalar_lea.vmem (!%p192_p7), [#allocation2], %s646_s28  ;;  %s716_s4 = smov (!%p192_p7), 1  }
  0x1a   : > { %s717_s5 = smov (!%p192_p7), 127   ;;  %s718_s6 = smov (!%p192_p7), 119  }
  0x1b   : > { %s719_s7 = smov (!%p192_p7), 118   ;;  %s720_s8 = smov (!%p192_p7), 9  }
  0x1c   : > { %s721_s9 = smov (!%p192_p7), 11   ;;  %s722_s10 = smov (!%p192_p7), 117  }
  0x1d   : > { %v784_v4 = vld [vmem:[%s781_s29 + $0x6] sm:$0x3]  ;;  %v791_v6 = vld [vmem:[%s781_s29 + $0x4] sm:$0x3]  ;;  %v803_v11 = vld [vmem:[%s781_s29 + $0x2] sm:$0x3] }
  0x1e   : > { %230 = vst [vmem:[#allocation1] ss:$4 sm:$0xff] %v784_v4  ;;  %v820_v20 = vld [vmem:[%s781_s29] sm:$0x3]  ;;  %vm257_vm0 = vcmask 80896   ;;  %vm378_vm1 = vcmask 1039360  }
  0x1f   : > { %vm287_vm2 = vcmask 7168   ;;  %vm319_vm3 = vcmask 1041408   ;;  %vm322_vm4 = vcmask 1043456   ;;  %vm325_vm5 = vcmask 1045504   ;;  %p220_p8 = scmp.lt.s32.totalorder %s639_s15, 1 }
  0x20   : > { %v339_v55 = vsel %vm319_vm3, %v784_v4, 0  ;;  %vm446_vm6 = vcmask 973824   ;;  %vm460_vm7 = vcmask 965632   ;;  %vm335_vm8 = vcmask 293888  }
  0x21   : > { %346 = vmatpush.bf16.msra.mxu0 %v339_v55  ;;  %vm528_vm9 = vcmask 957440   ;;  %vm364_vm10 = vcmask 72704   ;;  %vm240_vm11 = vcmask 89088   ;;  %s948_s15 = smov (!%p220_p8, %s639_s15), 1 }
  0x22   : > { %s647_s20 = sshll.u32 %s948_s15, 3 }
  0x23   : > { %s223_s23 = scalar_lea.vmem %s943_s3, %s647_s20 }
  0x25   : > { %v787_v5 = vld.sshfl [vmem:[#allocation1] sm:$0xff pattern:$0x73625140] }
  0x26   : > { %235 = vst [vmem:[#allocation1] ss:$4 sm:$0xff] %v784_v4 }
  0x2d   : > { %v793_v7 = vld.sshfl [vmem:[#allocation1] sm:$0xff pattern:$0x73625140] }
  0x2e   : > { %247 = vst [vmem:[#allocation1] ss:$4 sm:$0xff] %v791_v6 }
  0x35   : > { %v248_v8 = vld.sshfl [vmem:[#allocation1] sm:$0xff pattern:$0x73625140] }
  0x36   : > { %252 = vst [vmem:[#allocation1] ss:$4 sm:$0xff] %v791_v6  ;;  %250 = vrot.lane.b32.xlu1 %v248_v8, %s715_s30 }
  0x3d   : > { %v253_v9 = vld.sshfl [vmem:[#allocation1] sm:$0xff pattern:$0x73625140] }
  0x3e   : > { %261 = vst [vmem:[#allocation1] ss:$4 sm:$0xff] %v784_v4  ;;  %255 = vrot.lane.b32.xlu2 %v253_v9, %s715_s30 }
  0x45   : > { %v262_v10 = vld.sshfl [vmem:[#allocation1] sm:$0xff pattern:$0x73625140] }
  0x46   : > { %264 = vrot.lane.b32.xlu0 %v262_v10, %s715_s30  ;;  %266 = vst [vmem:[#allocation1] ss:$4 sm:$0xff] %v784_v4 }
  0x4d   : > { %v805_v12 = vld.sshfl [vmem:[#allocation1] sm:$0xff pattern:$0x73625140] }
  0x4e   : > { %277 = vst [vmem:[#allocation1] ss:$4 sm:$0xff] %v803_v11 }
  0x55   : > { %v278_v13 = vld.sshfl [vmem:[#allocation1] sm:$0xff pattern:$0x73625140] }
  0x56   : > { %282 = vst [vmem:[#allocation1] ss:$4 sm:$0xff] %v803_v11  ;;  %280 = vrot.lane.b32.xlu2 %v278_v13, %s716_s4 }
  0x5d   : > { %v283_v14 = vld.sshfl [vmem:[#allocation1] sm:$0xff pattern:$0x73625140] }
  0x5e   : > { %285 = vrot.lane.b32.xlu0 %v283_v14, %s716_s4  ;;  %292 = vst [vmem:[#allocation1] ss:$4 sm:$0xff] %v784_v4 }
  0x65   : > { %v293_v15 = vld.sshfl [vmem:[#allocation1] sm:$0xff pattern:$0x73625140] }
  0x66   : > { %295 = vrot.lane.b32.xlu0 %v293_v15, %s716_s4  ;;  %297 = vst [vmem:[#allocation1] ss:$4 sm:$0xff] %v784_v4 }
  0x6d   : > { %v298_v16 = vld.sshfl [vmem:[#allocation1] sm:$0xff pattern:$0x73625140] }
  0x6e   : > { %312 = vst [vmem:[#allocation1 + $0x1] ss:$4 sm:$0xff] %v803_v11  ;;  %300 = vrot.lane.b32.xlu1 %v298_v16, %s716_s4 }
  0x75   : > { %v812_v17 = vld.sshfl [vmem:[#allocation1] sm:$0xff pattern:$0x73625140] }
  0x76   : > { %317 = vst [vmem:[#allocation1 + $0x3] ss:$4 sm:$0xff] %v791_v6  ;;  %v330_v57 = vsel %vm319_vm3, %v820_v20, %v812_v17 }
  0x7d   : > { %v815_v18 = vld.sshfl [vmem:[#allocation1] sm:$0xff pattern:$0x73625140] }
  0x7e   : > { %354 = vst [vmem:[#allocation1] ss:$4 sm:$0xff] %v791_v6 }
  0x85   : > { %v355_v19 = vld.sshfl [vmem:[#allocation1] sm:$0xff pattern:$0x73625140] }
  0x86   : > { %359 = vst [vmem:[#allocation1] ss:$4 sm:$0xff] %v791_v6 }
  0x8d   : > { %v360_v21 = vld.sshfl [vmem:[#allocation1] sm:$0xff pattern:$0x73625140] }
  0x8e   : > { %368 = vst [vmem:[#allocation1] ss:$4 sm:$0xff] %v820_v20 }
  0x95   : > { %v369_v22 = vld.sshfl [vmem:[#allocation1] sm:$0xff pattern:$0x73625140] }
  0x96   : > { %373 = vst [vmem:[#allocation1] ss:$4 sm:$0xff] %v820_v20  ;;  %371 = vrot.lane.b32.xlu1 %v369_v22, %s717_s5 }
  0x98   : > { %v256_v38 = vpop.permute.xlu2 %255 }
  0x9d   : > { %v374_v23 = vld.sshfl [vmem:[#allocation1] sm:$0xff pattern:$0x73625140] }
  0x9e   : > { %382 = vst [vmem:[#allocation1] ss:$4 sm:$0xff] %v791_v6  ;;  %376 = vrot.lane.b32.xlu2 %v374_v23, %s717_s5 }
  0xa5   : > { %v383_v24 = vld.sshfl [vmem:[#allocation1] sm:$0xff pattern:$0x73625140] }
  0xa6   : > { %387 = vst [vmem:[#allocation1] ss:$4 sm:$0xff] %v791_v6  ;;  %385 = vrot.lane.b32.xlu1 %v383_v24, %s717_s5 }
  0xa8   : > { %v251_v39 = vpop.permute.xlu1 %250 }
  0xa9   : > { %v853_v40 = vsel %vm257_vm0, %v251_v39, %v256_v38 }
  0xad   : > { %v388_v25 = vld.sshfl [vmem:[#allocation1] sm:$0xff pattern:$0x73625140] }
  0xae   : > { %399 = vst [vmem:[#allocation1 + $0x3] ss:$4 sm:$0xff] %v820_v20  ;;  %390 = vrot.lane.b32.xlu1 %v388_v25, %s717_s5 }
  0xb0   : > { %v281_v45 = vpop.permute.xlu2 %280 }
  0xb5   : > { %v827_v26 = vld.sshfl [vmem:[#allocation1] sm:$0xff pattern:$0x73625140] }
  0xb6   : > { %404 = vst [vmem:[#allocation1 + $0x2] ss:$4 sm:$0xff] %v791_v6 }
  0xb8   : > { %v860_v43 = vpop.permute.xlu0 %264 }
  0xbd   : > { %v830_v27 = vld.sshfl [vmem:[#allocation1] sm:$0xff pattern:$0x73625140] }
  0xbe   : > { %407 = vst [vmem:[#allocation1 + $0x3] ss:$4 sm:$0xff] %v784_v4 }
  0xc5   : > { %v833_v28 = vld.sshfl [vmem:[#allocation1] sm:$0xff pattern:$0x73625140] }
  0xc6   : > { %436 = vst [vmem:[#allocation1] ss:$4 sm:$0xff] %v803_v11 }
  0xcd   : > { %v437_v29 = vld.sshfl [vmem:[#allocation1] sm:$0xff pattern:$0x73625140] }
  0xce   : > { %441 = vst [vmem:[#allocation1] ss:$4 sm:$0xff] %v803_v11  ;;  %439 = vrot.lane.b32.xlu2 %v437_v29, %s718_s6 }
  0xd0   : > { %v286_v47 = vpop.permute.xlu0 %285 }
  0xd1   : > { %v290_v16 = vsel %vm287_vm2, %v281_v45, %v286_v47 }
  0xd5   : > { %v442_v30 = vld.sshfl [vmem:[#allocation1] sm:$0xff pattern:$0x73625140] }
  0xd6   : > { %450 = vst [vmem:[#allocation1] ss:$4 sm:$0xff] %v820_v20  ;;  %444 = vrot.lane.b32.xlu2 %v442_v30, %s718_s6  ;;  %v723_v30 = vmov 0  }
  0xd7   : > { %690 = vset.pattern.permute.xlu0 %v723_v30 }
  0xd8   : > { %v296_v50 = vpop.permute.xlu0 %295 }
  0xdd   : > { %v451_v31 = vld.sshfl [vmem:[#allocation1] sm:$0xff pattern:$0x73625140] }
  0xde   : > { %455 = vst [vmem:[#allocation1] ss:$4 sm:$0xff] %v820_v20  ;;  %453 = vrot.lane.b32.xlu2 %v451_v31, %s719_s7 }
  0xe0   : > { %v301_v44 = vpop.permute.xlu1 %300 }
  0xe1   : > { %v304_v52 = vsel %vm287_vm2, %v296_v50, %v301_v44 }
  0xe2   : > { %v315_v56 = vrot.slane %v304_v52, 4  ;;  %v483_v23 = vrot.slane %v304_v52, 2 }
  0xe4   : > { %v332_v60 = vsel %vm322_vm4, %v330_v57, %v315_v56  ;;  %v310_v57 = vrot.slane %v290_v16, 2 }
  0xe5   : > { %v456_v32 = vld.sshfl [vmem:[#allocation1] sm:$0xff pattern:$0x73625140]  ;;  %v333_v0 = vsel %vm325_vm5, %v332_v60, %v815_v18 }
  0xe6   : > { %458 = vrot.lane.b32.xlu0 %v456_v32, %s719_s7  ;;  %464 = vst [vmem:[#allocation1] ss:$4 sm:$0xff] %v803_v11  ;;  %357 = vrot.lane.b32.xlu2 %v355_v19, %s720_s8 }
  0xe7   : > { %347 = vmatpush.bf16.msra.mxu0 %v333_v0 }
  0xed   : > { %v465_v33 = vld.sshfl [vmem:[#allocation1] sm:$0xff pattern:$0x73625140] }
  0xee   : > { %467 = vrot.lane.b32.xlu0 %v465_v33, %s719_s7  ;;  %469 = vst [vmem:[#allocation1] ss:$4 sm:$0xff] %v803_v11  ;;  %238 = vrot.lane.b32.xlu2 %v793_v7, %s721_s9 }
  0xf5   : > { %v470_v34 = vld.sshfl [vmem:[#allocation1] sm:$0xff pattern:$0x73625140] }
  0xf6   : > { %472 = vrot.lane.b32.xlu0 %v470_v34, %s719_s7  ;;  %478 = vst [vmem:[#allocation1 + $0x1] ss:$4 sm:$0xff] %v820_v20 }
  0xf8   : > { %v377_v48 = vpop.permute.xlu2 %376 }
  0xfd   : > { %v843_v35 = vld.sshfl [vmem:[#allocation1] sm:$0xff pattern:$0x73625140] }
  0xfe   : > { %481 = vst [vmem:[#allocation1 + $0x2] ss:$4 sm:$0xff] %v803_v11 }
 0x105   : > { %v846_v36 = vld.sshfl [vmem:[#allocation1] sm:$0xff pattern:$0x73625140] }
 0x106   : > { %485 = vst [vmem:[#allocation1 + $0x1] ss:$4 sm:$0xff] %v784_v4 }
 0x108   : > { %v372_v46 = vpop.permute.xlu1 %371 }
 0x109   : > { %v381_v51 = vsel %vm378_vm1, %v372_v46, %v377_v48 }
 0x10a   : > { %v402_v54 = vrot.slane %v381_v51, 6  ;;  %v535_v7 = vrot.slane %v381_v51, 4 }
 0x10c   : > { %v416_v59 = vsel %vm319_vm3, %v803_v11, %v402_v54 }
 0x10d   : > { %v849_v37 = vld.sshfl [vmem:[#allocation1] sm:$0xff pattern:$0x73625140]  ;;  %v417_v62 = vsel %vm322_vm4, %v416_v59, %v830_v27 }
 0x10e   : > { %518 = vst [vmem:[#allocation1] ss:$4 sm:$0xff] %v820_v20  ;;  %v418_v2 = vsel %vm325_vm5, %v417_v62, %v833_v28  ;;  %v496_v15 = vsel %vm319_vm3, %v791_v6, %v849_v37  ;;  %v225_v27 = vld [vmem:[%s941_s1] sm:$0xf] }
 0x10f   : > { %v226_v28 = vld [vmem:[%s942_s2] sm:$0xff] }
 0x115   : > { %v519_v41 = vld.sshfl [vmem:[#allocation1] sm:$0xff pattern:$0x73625140] }
 0x116   : > { %521 = vrot.lane.b32.xlu0 %v519_v41, %s722_s10  ;;  %523 = vst [vmem:[#allocation1] ss:$4 sm:$0xff] %v820_v20 }
 0x118   : > { %v386_v49 = vpop.permute.xlu1 %385 }
 0x11d   : > { %v524_v42 = vld.sshfl [vmem:[#allocation1] sm:$0xff pattern:$0x73625140] }
 0x11e   : > { %526 = vrot.lane.b32.xlu1 %v524_v42, %s722_s10  ;;  %533 = vst [vmem:[#allocation1 + $0x1] ss:$4 sm:$0xff] %v803_v11  ;;  %362 = vrot.lane.b32.xlu0 %v360_v21, %s720_s8  ;;  %v491_v21 = vsel %vm319_vm3, %v290_v16, %v843_v35 }
 0x11f   : > { %v492_v25 = vsel %vm322_vm4, %v491_v21, %v846_v36 }
 0x120   : > { %v391_v58 = vpop.permute.xlu1 %390 }
 0x121   : > { %v394_v61 = vsel %vm378_vm1, %v386_v49, %v391_v58 }
 0x122   : > { %v420_v1 = vsel %vm319_vm3, %v394_v61, 0  ;;  %v540_v31 = vrot.slane %v394_v61, 6 }
 0x123   : > { %427 = vmatpush.bf16.msra.mxu1 %v420_v1 }
 0x124   : > { %v550_v34 = vsel %vm319_vm3, %v784_v4, %v540_v31 }
 0x125   : > { %v534_v63 = vld.sshfl [vmem:[#allocation1] sm:$0xff pattern:$0x73625140] }
 0x126   : > { %269 = vrot.lane.b32.xlu1 %v805_v12, %s715_s30  ;;  %537 = vst [vmem:[#allocation1 + $0x3] ss:$4 sm:$0xff] %v791_v6  ;;  %v544_v8 = vsel %vm319_vm3, %v820_v20, %v534_v63  ;;  %v494_v6 = vsel %vm325_vm5, %v492_v25, %v483_v23  ;;  %574 = vperm.xlu0 %690, %v226_v28  }
 0x127   : > { %428 = vmatpush.bf16.msra.mxu1 %v418_v2  ;;  %v546_v9 = vsel %vm322_vm4, %v544_v8, %v535_v7 }
 0x128   : > { %v440_v53 = vpop.permute.xlu2 %439 }
 0x12d   : > { %v538_v45 = vld.sshfl [vmem:[#allocation1] sm:$0xff pattern:$0x73625140] }
 0x12e   : > { %233 = vrot.lane.b32.xlu1 %v787_v5, %s721_s9  ;;  %v547_v49 = vsel %vm325_vm5, %v546_v9, %v538_v45 }
 0x130   : > { %v445_v5 = vpop.permute.xlu2 %444 }
 0x131   : > { %v449_v11 = vsel %vm446_vm6, %v440_v53, %v445_v5 }
 0x132   : > { %v488_v13 = vrot.slane %v449_v11, 4 }
 0x134   : > { %v498_v20 = vsel %vm322_vm4, %v496_v15, %v488_v13 }
 0x138   : > { %v454_v12 = vpop.permute.xlu2 %453 }
 0x140   : > { %v358_v39 = vpop.permute.xlu2 %357 }
 0x148   : > { %v239_v53 = vpop.permute.xlu2 %238 }
 0x158   : > { %v459_v3 = vpop.permute.xlu0 %458 }
 0x159   : > { %v463_v14 = vsel %vm460_vm7, %v454_v12, %v459_v3 }
 0x15a   : > { %v490_v18 = vrot.slane %v463_v14, 2  ;;  %v541_v32 = vrot.slane %v463_v14, 4 }
 0x15c   : > { %v500_v24 = vsel %vm325_vm5, %v498_v20, %v490_v18  ;;  %v552_v38 = vsel %vm322_vm4, %v550_v34, %v541_v32 }
 0x160   : > { %v468_v10 = vpop.permute.xlu0 %467 }
 0x168   : > { %v473_v17 = vpop.permute.xlu0 %472 }
 0x169   : > { %v476_v19 = vsel %vm460_vm7, %v468_v10, %v473_v17 }
 0x16a   : > { %v502_v22 = vsel %vm319_vm3, %v476_v19, 0  ;;  %v543_v36 = vrot.slane %v476_v19, 2 }
 0x16b   : > { %509 = vmatpush.bf16.msra.mxu2 %v502_v22 }
 0x16c   : > { %v554_v42 = vsel %vm325_vm5, %v552_v38, %v543_v36 }
 0x16f   : > { %510 = vmatpush.bf16.msra.mxu2 %v500_v24 }
 0x173   : > { %511 = vmatpush.bf16.msra.mxu2 %v494_v6 }
 0x176   : > { %653 = vmatmul.msk.bf16.vlgmr.msra.gmra.mxu2 %vm335_vm8, %v225_v27 }
 0x188   : > { %v522_v29 = vpop.permute.xlu0 %521 }
 0x190   : > { %v527_v33 = vpop.permute.xlu1 %526  ;;  %v363_v41 = vpop.permute.xlu0 %362 }
 0x191   : > { %v531_v35 = vsel %vm528_vm9, %v522_v29, %v527_v33  ;;  %v367_v44 = vsel %vm364_vm10, %v358_v39, %v363_v41 }
 0x192   : > { %v556_v37 = vsel %vm319_vm3, %v531_v35, 0  ;;  %v397_v47 = vrot.slane %v367_v44, 4 }
 0x193   : > { %563 = vmatpush.bf16.msra.mxu3 %v556_v37 }
 0x197   : > { %564 = vmatpush.bf16.msra.mxu3 %v554_v42 }
 0x198   : > { %v270_v46 = vpop.permute.xlu1 %269  ;;  %v575_v5 = vpop.permute.xlu0 %574 }
 0x199   : > { %v273_v4 = vsel %vm257_vm0, %v860_v43, %v270_v46  ;;  %v306_v43 = vrot.slane %v853_v40, 6 }
 0x19a   : > { %v395_v48 = vrot.slane %v273_v4, 6  ;;  %v308_v55 = vrot.slane %v273_v4, 4 }
 0x19b   : > { %565 = vmatpush.bf16.msra.mxu3 %v547_v49 }
 0x19c   : > { %v410_v50 = vsel %vm319_vm3, %v853_v40, %v395_v48 }
 0x19d   : > { %v412_v51 = vsel %vm322_vm4, %v410_v50, %v397_v47 }
 0x19e   : > { %654 = vmatmul.msk.bf16.vlgmr.msra.gmra.mxu3 %vm335_vm8, %v225_v27  ;;  %v413_v52 = vsel %vm325_vm5, %v412_v51, %v827_v26 }
 0x19f   : > { %429 = vmatpush.bf16.msra.mxu1 %v413_v52 }
 0x1a0   : > { %v234_v54 = vpop.permute.xlu1 %233 }
 0x1a1   : > { %v243_v56 = vsel %vm240_vm11, %v234_v54, %v239_v53 }
 0x1a2   : > { %v321_v58 = vsel %vm319_vm3, %v243_v56, %v306_v43  ;;  %652 = vmatmul.msk.bf16.vlgmr.msra.gmra.mxu1 %vm335_vm8, %v225_v27 }
 0x1a3   : > { %v324_v59 = vsel %vm322_vm4, %v321_v58, %v308_v55 }
 0x1a4   : > { %v327_v60 = vsel %vm325_vm5, %v324_v59, %v310_v57 }
 0x1a5   : > { %348 = vmatpush.bf16.msra.mxu0 %v327_v60 }
 0x1a8   : > { %651 = vmatmul.msk.bf16.vlgmr.msra.gmra.mxu0 %vm335_vm8, %v225_v27 }
 0x1f9   : > { %v513_v26 = vpop.f32.mrf.mxu2 }
 0x201   : > { %v515_v61 = vpop.f32.mrf.mxu2 }
 0x21f   : > { %v431_v62 = vpop.f32.mrf.mxu1 }
 0x221   : > { %v567_v40 = vpop.f32.mrf.mxu3 }
 0x225   : > { %v350_v63 = vpop.f32.mrf.mxu0 }
 0x226   : > { %v435_v0 = vmax.f32 %v350_v63, %v431_v62 }
 0x227   : > { %v433_v1 = vpop.f32.mrf.mxu1 }
 0x228   : > { %v517_v2 = vmax.f32 %v435_v0, %v513_v26 }
 0x229   : > { %v569_v3 = vpop.f32.mrf.mxu3 }
 0x22a   : > { %v571_v7 = vmax.f32 %v517_v2, %v567_v40 }
 0x22c   : > { %v577_v8 = vadd.f32 %v575_v5, %v571_v7 }
 0x22d   : > { %v352_v9 = vpop.f32.mrf.mxu0 }
 0x22e   : > { %v578_v10 = vmax.f32 %v577_v8, 0.0 }
 0x230   : > { %579 = vst [vmem:[%s223_s23] sm:$0xff] %v578_v10 }
 0x231 PF: > { %p10_p9 = scmp.ge.s32.totalorder %s761_s16, 4   ;;  %s944_s12 = smov %s709_s13 }
 0x232   : > { %s945_s13 = smov %s770_s19  ;;  %s946_s14 = smov %s761_s16 }
 0x233   :  { %12 = sbr.rel (!%p10_p9) target bundleno = 2 (0x2), region = 121 }

</bundles_post_ra>
